<compile_context>
chip_gen: v7x
topology: tpu7x:2x2x1
jax: 0.10.0
libtpu: 0.0.40
codegen_flags: <defaults>
</compile_context>

<pallas_src>
import functools

import jax
import jax.numpy as jnp
from jax.experimental import pallas as pl
from jax.experimental.pallas import tpu as pltpu

PAD = (0, 0, 2, 0, 0, 0)  # (w_left, w_right, h_top, h_bottom, d_front, d_back)


def _round_up(x, m):
    return (x + m - 1) // m * m


def _sublane(itemsize):
    # Packed sublane tile height: f32 -> 8, bf16 -> 16, int8 -> 32.
    return max(8, 32 // max(itemsize, 1))


def _vmem_budget():
    """Returns (per-grid-step payload budget, vmem_limit_bytes)."""
    try:
        cap = pltpu.get_tpu_info().vmem_capacity_bytes
    except Exception:
        cap = 0
    if cap >= (100 << 20):        # v5e / v6e: 128 MiB physical VMEM
        return 16 << 20, 64 << 20
    # v7x (64 MiB per TensorCore) or unknown: stay conservative.
    return 8 << 20, 32 << 20


def _pad_top_kernel_2d(x_ref, o_ref, *, pad_top):
    # x_ref: (H, TC)   o_ref: (H + pad_top, TC); lane-dense column tiles.
    # Interior slab stored directly (not held live across the pad-row writes).
    o_ref[pad_top:, :] = x_ref[...]
    # Reflected rows (edge excluded): out[j] = in[pad_top - j].
    for j in range(pad_top):                       # pad_top tiny & static
        src = pad_top - j
        o_ref[j:j + 1, :] = x_ref[src:src + 1, :]


def _pad_top_kernel_3d(x_ref, o_ref, *, pad_top):
    # x_ref: (TB, H, W)   o_ref: (TB, H + pad_top, W); W already lane-dense.
    o_ref[:, pad_top:, :] = x_ref[...]
    for j in range(pad_top):
        src = pad_top - j
        o_ref[:, j:j + 1, :] = x_ref[:, src:src + 1, :]


def reflection_pad3d_top(x, pad_top=2):
    """aten.reflection_pad3d(x, (0, 0, pad_top, 0, 0, 0)) for a 5-D tensor."""
    assert x.ndim == 5, "expected (N, C, D, H, W)"
    N, C, D, H, W = x.shape
    assert 0 < pad_top < H, "reflection pad requires pad < padded dim size"
    out_h = H + pad_top
    B = N * C * D
    itemsize = jnp.dtype(x.dtype).itemsize
    sub = _sublane(itemsize)
    budget, vmem_limit = _vmem_budget()

    rows_pad = _round_up(H, sub) + _round_up(out_h, sub)   # padded in+out rows

    if W >= 128 and W % 128 == 0:
        # ---- Path A: W already lane-dense; keep (B, H, W), tile along B. ----
        xb = x.reshape(B, H, W)
        per_row = rows_pad * W * itemsize * 2               # double-buffered
        TB = int(max(1, min(B, budget // max(per_row, 1))))
        total_bytes = B * rows_pad * W * itemsize
        if total_bytes > (1 << 20):
            # Ensure >= ~4 grid steps so both TensorCores split the copy.
            TB = min(TB, max(1, pl.cdiv(B, 4)))
        grid = (pl.cdiv(B, TB),)
        out = pl.pallas_call(
            functools.partial(_pad_top_kernel_3d, pad_top=pad_top),
            out_shape=jax.ShapeDtypeStruct((B, out_h, W), x.dtype),
            grid=grid,
            in_specs=[pl.BlockSpec((TB, H, W), lambda i: (i, 0, 0))],
            out_specs=pl.BlockSpec((TB, out_h, W), lambda i: (i, 0, 0)),
            compiler_params=pltpu.CompilerParams(
                dimension_semantics=("parallel",),
                vmem_limit_bytes=vmem_limit,
            ),
        )(xb)
        return out.reshape(N, C, D, out_h, W)

    # ---- Path B: lane-sparse W -> present the copy as (H, B*W). ----
    BW = B * W
    xcols = x.reshape(B, H, W).transpose(1, 0, 2).reshape(H, BW)
    col_bytes = rows_pad * itemsize                          # per column (in+out)
    padded_total = col_bytes * _round_up(BW, 128) * 2        # double-buffered

    if padded_total <= (2 << 20):
        # Tiny input (the module's fixed shape lands here): single gridless
        # call, whole arrays in VMEM, no pipeline machinery.
        out2 = pl.pallas_call(
            functools.partial(_pad_top_kernel_2d, pad_top=pad_top),
            out_shape=jax.ShapeDtypeStruct((out_h, BW), x.dtype),
            compiler_params=pltpu.CompilerParams(vmem_limit_bytes=vmem_limit),
        )(xcols)
    else:
        per_col = col_bytes * 2
        TC = (budget // per_col) // 128 * 128
        TC = max(128, int(TC))
        # Aim for >= ~4 grid steps so both TensorCores share the copy.
        TC = min(TC, max(128, _round_up(pl.cdiv(BW, 4), 128)))
        grid = (pl.cdiv(BW, TC),)
        out2 = pl.pallas_call(
            functools.partial(_pad_top_kernel_2d, pad_top=pad_top),
            out_shape=jax.ShapeDtypeStruct((out_h, BW), x.dtype),
            grid=grid,
            in_specs=[pl.BlockSpec((H, TC), lambda i: (0, i))],
            out_specs=pl.BlockSpec((out_h, TC), lambda i: (0, i)),
            compiler_params=pltpu.CompilerParams(
                dimension_semantics=("parallel",),
                vmem_limit_bytes=vmem_limit,
            ),
        )(xcols)

    return (out2.reshape(out_h, B, W)
                .transpose(1, 0, 2)
                .reshape(N, C, D, out_h, W))


# TODO(synk): general reflection_pad3d (nonzero W/D/bottom pads, which need
# lane-axis flips or cross-block gathers) is not implemented; this module only
# uses a top pad of 2 on H.


def _check(shape, pad_top=2):
    key = jax.random.PRNGKey(0)
    x = jax.random.normal(key, shape, dtype=jnp.float32)
    out = jax.block_until_ready(reflection_pad3d_top(x, pad_top=pad_top))
    ref = jnp.pad(x, ((0, 0), (0, 0), (0, 0), (pad_top, 0), (0, 0)),
                  mode="reflect")
    assert out.shape == ref.shape, (out.shape, ref.shape)
    assert jnp.allclose(out, ref), f"mismatch for shape {shape}"


if __name__ == "__main__":
    # Shape fixed by the module annotation: [1, 3, 4, 5, 6] float32
    # (tiny gridless lane-dense path).
    _check((1, 3, 4, 5, 6))
    # Larger lane-sparse-W shape -> exercises the tiled (H, B*W) grid path.
    _check((4, 32, 32, 5, 6))
    # W already a multiple of 128 -> exercises the (B, H, W) path.
    _check((1, 2, 2, 5, 128))
    print("KERNEL_OK")
</pallas_src>

<mosaic_0001>
module attributes {stable_mosaic.version = 11 : i64} {
  func.func @_pad_top_kernel_2d(%arg0: memref<5x72xf32, #tpu.memory_space<vmem>>, %arg1: memref<7x72xf32, #tpu.memory_space<vmem>>) attributes {dimension_semantics = [], scalar_prefetch = 0 : i64, scratch_operands = 0 : i64, tpu.core_type = #tpu.core_type<tc>} {
    %c0 = arith.constant 0 : index
    %c0_0 = arith.constant 0 : index
    %0 = vector.load %arg0[%c0, %c0_0] : memref<5x72xf32, #tpu.memory_space<vmem>>, vector<5x72xf32>
    %c2 = arith.constant 2 : index
    %c0_1 = arith.constant 0 : index
    %1 = vector.load %arg1[%c2, %c0_1] : memref<7x72xf32, #tpu.memory_space<vmem>>, vector<5x72xf32>
    tpu.vector_store %arg1[%c2, %c0_1], %0 {strides = array<i32>} : memref<7x72xf32, #tpu.memory_space<vmem>>, vector<5x72xf32>,
    %c2_2 = arith.constant 2 : index
    %c0_3 = arith.constant 0 : index
    %2 = vector.load %arg0[%c2_2, %c0_3] : memref<5x72xf32, #tpu.memory_space<vmem>>, vector<1x72xf32>
    %c0_4 = arith.constant 0 : index
    %c0_5 = arith.constant 0 : index
    %3 = vector.load %arg1[%c0_4, %c0_5] : memref<7x72xf32, #tpu.memory_space<vmem>>, vector<1x72xf32>
    tpu.vector_store %arg1[%c0_4, %c0_5], %2 {strides = array<i32>} : memref<7x72xf32, #tpu.memory_space<vmem>>, vector<1x72xf32>,
    %c1 = arith.constant 1 : index
    %c0_6 = arith.constant 0 : index
    %4 = vector.load %arg0[%c1, %c0_6] : memref<5x72xf32, #tpu.memory_space<vmem>>, vector<1x72xf32>
    %c1_7 = arith.constant 1 : index
    %c0_8 = arith.constant 0 : index
    %5 = vector.load %arg1[%c1_7, %c0_8] : memref<7x72xf32, #tpu.memory_space<vmem>>, vector<1x72xf32>
    tpu.vector_store %arg1[%c1_7, %c0_8], %4 {strides = array<i32>} : memref<7x72xf32, #tpu.memory_space<vmem>>, vector<1x72xf32>,
    return
  }
}

</mosaic_0001>

<bundles_post_ra>
// kernel: tpu_custom_call.1
= control target key start
LH: loop header
LB: loop body
LE: loop exit
PB: predicated region body
PF: predicated region fallthrough
CT: control target
= control target key end

     0   :  { %6 = vsyncpa [#allocation3], 0  ;;  %s130_s0 = inlined_call_operand.hbm [shape: f32[5,72], index: 0, kind: input, shape index: {}]   ;;  %s131_s1 = inlined_call_operand.hbm [shape: f32[7,72], index: 1, kind: output, shape index: {}]  }
   0x1   :  { %7 = vsyncpa [#allocation4], 0  ;;  %s94_s6 = smov [#allocation2]   ;;  %s46_s10 = scalar_lea.hbm %s130_s0, 128 }
   0x2   :  { %s14_s7 = sshll.u32 %s94_s6, 4  ;;  %p47_p0 = scmp.ne.s32.totalorder %s130_s0, %s46_s10  ;;  %s15_s7 = int_to_ptr.vmem [resolvable:$true] %s14_s7 }
   0x3   :  { %p50_p1 = scmp.lt.u32.totalorder %s46_s10, %s130_s0 }
   0x5   :  { %p52_p2 = pnand %p50_p1, %p47_p0 }
   0x7   :  { %55 = shalt.err (!%p52_p2)
}
   0x8   :  { %s56_s15 = scalar_lea.vmem %s15_s7, 128  ;;  %p61_p4 = scmp.lt.s32.totalorder %s15_s7, %s15_s7 }
   0x9   :  { %p57_p3 = scmp.ne.s32.totalorder %s15_s7, %s56_s15  ;;  %p62_p5 = scmp.lt.s32.totalorder %s56_s15, %s56_s15 }
   0xb   :  { %p63_p6 = por %p62_p5, %p61_p4 }
   0xd   :  { %p64_p7 = pnand %p63_p6, %p57_p3 }
   0xf   :  { %67 = shalt.err (!%p64_p7)
}
  0x10   :  { %17 = dma.hbm_to_vmem [thread:$0]  %s130_s0, 128, %s15_s7, [#allocation3]  }
  0x11   :  { %90 = dma.done.wait [#allocation3], 128  }
  0x12   :  { %91 = vsyncadd [#allocation3], 4294967168  ;;  %s95_s18 = smov [#allocation5]   ;;  %vm22_vm0 = vcmask 585728   ;;  %vm25_vm1 = vcmask 581632  }
  0x13   :  { %s35_s19 = sshll.u32 %s95_s18, 4  ;;  %v21_v0 = vld [vmem:[#allocation2] sm:$0x1f]  ;;  %s36_s19 = int_to_ptr.vmem [resolvable:$true] %s35_s19 }
  0x14   :  { %v24_v1 = vld [vmem:[#allocation2 + $0x2] sm:$0x1]  ;;  %v27_v2 = vld [vmem:[#allocation2 + $0x1] sm:$0x1]  ;;  %23 = vst.msk [vmem:[#allocation5 + $0x2] sm:$0x1f] %vm22_vm0, %v21_v0  ;;  %p73_p9 = scmp.lt.s32.totalorder %s36_s19, %s36_s19 }
  0x15   :  { %26 = vst.msk [vmem:[#allocation5] sm:$0x1] %vm25_vm1, %v24_v1  ;;  %28 = vst.msk [vmem:[#allocation5 + $0x1] sm:$0x1] %vm25_vm1, %v27_v2  ;;  %s68_s20 = scalar_lea.vmem %s36_s19, 128 }
  0x16   :  { %p69_p8 = scmp.ne.s32.totalorder %s36_s19, %s68_s20  ;;  %p74_p10 = scmp.lt.s32.totalorder %s68_s20, %s68_s20 }
  0x18   :  { %p75_p11 = por %p74_p10, %p73_p9 }
  0x1a   :  { %p76_p12 = pnand %p75_p11, %p69_p8 }
  0x1c   :  { %79 = shalt.err (!%p76_p12)
}
  0x1d   :  { %s80_s22 = scalar_lea.hbm %s131_s1, 128 }
  0x1e   :  { %p81_p13 = scmp.ne.s32.totalorder %s131_s1, %s80_s22  ;;  %p84_p0 = scmp.lt.u32.totalorder %s80_s22, %s131_s1 }
  0x20   :  { %p86_p1 = pnand %p84_p0, %p81_p13 }
  0x22   :  { %89 = shalt.err (!%p86_p1)
}
  0x23   :  { %38 = dma.vmem_to_hbm [thread:$0]  %s36_s19, 128, %s131_s1, [#allocation4]  }
  0x24   :  { %92 = dma.done.wait [#allocation4], 128  }
  0x25   :  { %93 = vsyncadd [#allocation4], 4294967168 }
  0x26   :  { %42 = vsyncpa [#allocation3], 1 }
  0x27   :  { %43 = vsyncpa [#allocation4], 1 }

</bundles_post_ra>
